<compile_context>
chip_gen: v5e
topology: v5e:2x2
jax: 0.10.0
libtpu: 0.0.40
codegen_flags: <defaults>
</compile_context>

<pallas_src>
import jax
import jax.numpy as jnp
from jax.experimental import pallas as pl
from jax.experimental.pallas import tpu as pltpu

_LANE = 128
_SUBLANE = 16          # covers bf16 sublane packing (f32 only needs 8)
_MAX_TB = 8192         # batch-tile row cap (review: 2048-8192 range)


def _round_up(x, m):
    return (x + m - 1) // m * m


def _vmem_capacity_bytes():
    # Chip-aware physical VMEM (64 MiB on v7x, 128 MiB on v5e/v6e).
    try:
        return int(pltpu.get_tpu_info().vmem_capacity_bytes)
    except Exception:
        return 64 * 1024 * 1024    # conservative (v7x) fallback


def _linear_relu_kernel(x_ref, w_ref, b_ref, o_ref):
    # Fused TorchModel dtype cast: the x tile arrives in its native dtype (e.g. bf16)
    # and is widened to f32 on the VPU here — free filler under the MXU — instead of a
    # separate XLA cast op writing a full extra copy of x to HBM.
    # TODO(synk): on v6e/v7x a bf16 MXU path (keep x bf16, f32 accumulate) would halve
    # x bytes but deviates from TorchModel's strict f32 cast; kept f32 for parity.
    x = x_ref[...].astype(jnp.float32)
    y = jnp.dot(x, w_ref[...], preferred_element_type=jnp.float32) + b_ref[...]
    o_ref[...] = jnp.maximum(y, 0.0).astype(o_ref.dtype)


def _choose_batch_tile(rows, in_row_bytes, out_row_bytes, resident_bytes):
    """Pick the batch-tile row count.

    Big tiles amortize the ~600-cycle per-grid-step overhead; for non-trivial batches
    we want >= 2 grid steps so v7x's two TensorCores both get work; and the working
    set (resident W/bias + 2x double-buffered x/out tiles) must stay under ~half of
    physical VMEM per core.
    """
    phys = _vmem_capacity_bytes()
    tile_budget = max(phys // 2 - 2 * resident_bytes, 1 << 20)
    cap = tile_budget // (2 * (in_row_bytes + out_row_bytes))
    cap = max(_SUBLANE, min(_MAX_TB, (cap // _SUBLANE) * _SUBLANE))

    if rows <= 2 * _SUBLANE:
        return rows                                   # single full-array tile: no pad
    two_way = _round_up(-(-rows // 2), _SUBLANE)      # >= 2 steps -> both v7x TCs busy
    return min(cap, two_way)


def linear_relu_pallas(x, w, b, out_dtype=jnp.float32):
    """y = relu(x @ w + b) as one batch-tiled Pallas kernel.

    x: (B, IN) any float dtype (cast to f32 inside the kernel)
    w: (IN, OUT) float32, b: (1, OUT) float32.
    Blocks span the full feature width (block dim == full array dim), so there is no
    feature-axis padding and no trailing feature slice.
    """
    B, IN = x.shape
    IN_w, OUT = w.shape
    assert IN_w == IN, "weight/input feature mismatch"
    out_dtype = jnp.dtype(out_dtype)

    resident = w.size * w.dtype.itemsize + b.size * b.dtype.itemsize
    tb = _choose_batch_tile(B, IN * x.dtype.itemsize, OUT * out_dtype.itemsize,
                            resident)
    b_pad = _round_up(B, tb)
    xp = x if b_pad == B else jnp.pad(x, ((0, b_pad - B), (0, 0)))
    grid = (b_pad // tb,)

    # Scheduler hint from the TRUE problem size (unpadded) so XLA does not treat the
    # call as compute-heavy and miss overlap opportunities in larger graphs.
    cost = pl.CostEstimate(
        flops=2 * B * IN * OUT,
        transcendentals=0,
        bytes_accessed=(x.size * x.dtype.itemsize + resident
                        + B * OUT * out_dtype.itemsize),
    )

    cp_kwargs = {"dimension_semantics": ("parallel",)}   # v7x: batch over both TCs
    need = 2 * resident + 2 * tb * (IN * x.dtype.itemsize + OUT * out_dtype.itemsize)
    phys = _vmem_capacity_bytes()
    if need > 16 * 1024 * 1024:          # above the smallest (v5e) scoped default
        cp_kwargs["vmem_limit_bytes"] = min(int(need * 1.25), phys - (8 << 20))

    # TODO(synk): at real layer sizes, mark W/bias single-buffered
    # (pipeline_mode=pl.Buffered(1); constant index_map) to halve resident VMEM.
    out = pl.pallas_call(
        _linear_relu_kernel,
        out_shape=jax.ShapeDtypeStruct((b_pad, OUT), out_dtype),
        grid_spec=pltpu.PrefetchScalarGridSpec(
            num_scalar_prefetch=0,
            grid=grid,
            in_specs=[
                pl.BlockSpec((tb, IN), lambda i: (i, 0)),    # x: batch-tiled
                pl.BlockSpec((IN, OUT), lambda i: (0, 0)),   # W: resident in VMEM
                pl.BlockSpec((1, OUT), lambda i: (0, 0)),    # bias: resident
            ],
            out_specs=pl.BlockSpec((tb, OUT), lambda i: (i, 0)),
        ),
        compiler_params=pltpu.CompilerParams(**cp_kwargs),
        cost_estimate=cost,
    )(xp, w, b)

    return out if b_pad == B else out[:B]


def pack_params(params):
    """One-time lane-dense packing of the weight layout (hoisted out of the forward).

    For small square feature widths that divide 128, pre-build a block-diagonal
    (pack*IN, pack*OUT) weight = kron(I_pack, W) and a pack-tiled bias. The forward
    then views x (B, IN) as (B//pack, pack*IN) via a free contiguous reshape, so every
    vector load/store is a full unmasked 128-lane access and each MXU pass carries
    `pack` useful blocks — zero extra HBM bytes, no per-call pad op.
    """
    w_t, bias = params["weight_t"], params["bias"]
    IN, OUT = w_t.shape
    if IN == OUT and _LANE % IN == 0 and IN < _LANE:
        pack = _LANE // IN
        w_blk = jnp.kron(jnp.eye(pack, dtype=w_t.dtype), w_t)      # (pack*IN, pack*OUT)
        b_blk = jnp.tile(bias, (1, pack))                          # (1, pack*OUT)
        params = dict(params, weight_blkdiag=w_blk, bias_tiled=b_blk, pack=pack)
    return params


def init_params(key, in_features=32, out_features=32):
    """Deterministic init mimicking nn.Linear(in_features, out_features)."""
    k_w, k_b = jax.random.split(key)
    bound = 1.0 / jnp.sqrt(in_features)
    # PyTorch stores weight as (out, in); we store it pre-transposed as (in, out).
    w_t = jax.random.uniform(k_w, (in_features, out_features),
                             minval=-bound, maxval=bound, dtype=jnp.float32)
    bias = jax.random.uniform(k_b, (1, out_features),
                              minval=-bound, maxval=bound, dtype=jnp.float32)
    return pack_params({"weight_t": w_t, "bias": bias})


def torch_model_forward(x, params, dtype=jnp.float32):
    """Equivalent of TorchModel.__call__ / forward.

    TorchModel casts every input arg (and the module, done once at init here) to the
    model dtype and applies the wrapped module. The input cast is fused inside the
    Pallas kernel.
    """
    # TODO(synk): autograd set_grad_enabled, train/eval mode and DataParallel device
    # placement are framework-level concerns with no Pallas-kernel equivalent.
    x = jnp.asarray(x)
    B, IN = x.shape
    OUT = params["weight_t"].shape[1]
    pack = params.get("pack", 1)
    if pack > 1 and B % pack == 0:
        # Free contiguous reshape to a lane-dense (B//pack, pack*IN) view.
        x_view = x.reshape(B // pack, pack * IN)
        y_view = linear_relu_pallas(x_view, params["weight_blkdiag"],
                                    params["bias_tiled"], out_dtype=dtype)
        return y_view.reshape(B, OUT)
    # Fallback (batch not divisible by pack): unpadded 32-wide blocks.
    return linear_relu_pallas(x, params["weight_t"], params["bias"], out_dtype=dtype)


if __name__ == "__main__":
    key = jax.random.PRNGKey(0)
    k_param, k_x = jax.random.split(key)

    B, IN, OUT = 8, 32, 32
    params = init_params(k_param, IN, OUT)

    # Input deliberately in bfloat16 to exercise TorchModel's fused dtype cast.
    x = jax.random.normal(k_x, (B, IN), dtype=jnp.bfloat16)

    y = jax.block_until_ready(torch_model_forward(x, params, dtype=jnp.float32))

    # Cross-check against a plain-JAX reference of the same forward pass.
    x32 = x.astype(jnp.float32)
    ref = jnp.maximum(x32 @ params["weight_t"] + params["bias"], 0.0)
    assert y.shape == (B, OUT) and y.dtype == jnp.float32
    assert jnp.allclose(y, ref, atol=1e-4, rtol=1e-4), float(jnp.max(jnp.abs(y - ref)))

    # Also exercise the unpacked fallback path (batch not divisible by pack).
    x_odd = jax.random.normal(k_x, (5, IN), dtype=jnp.float32)
    y_odd = jax.block_until_ready(torch_model_forward(x_odd, params, dtype=jnp.float32))
    ref_odd = jnp.maximum(x_odd @ params["weight_t"] + params["bias"], 0.0)
    assert jnp.allclose(y_odd, ref_odd, atol=1e-4, rtol=1e-4)

    print("KERNEL_OK")
</pallas_src>

<mosaic_0001>
module attributes {stable_mosaic.version = 11 : i64} {
  func.func @_linear_relu_kernel(%arg0: i32, %arg1: memref<2x128xbf16, #tpu.memory_space<vmem>>, %arg2: memref<128x128xf32, #tpu.memory_space<vmem>>, %arg3: memref<1x128xf32, #tpu.memory_space<vmem>>, %arg4: memref<2x128xf32, #tpu.memory_space<vmem>>) attributes {dimension_semantics = [#tpu.dimension_semantics<parallel>], iteration_bounds = array<i64: 1>, scalar_prefetch = 0 : i64, scratch_operands = 0 : i64, tpu.core_type = #tpu.core_type<tc>, window_params = [{transform_indices = @transform_0, window_bounds = array<i64: 2, 128>}, {pipeline_mode = #tpu.pipeline_mode<synchronous>, transform_indices = @transform_1, window_bounds = array<i64: 128, 128>}, {pipeline_mode = #tpu.pipeline_mode<synchronous>, transform_indices = @transform_2, window_bounds = array<i64: 1, 128>}, {transform_indices = @transform_3, window_bounds = array<i64: 2, 128>}]} {
    %c0 = arith.constant 0 : index
    %c0_0 = arith.constant 0 : index
    %0 = vector.load %arg1[%c0, %c0_0] : memref<2x128xbf16, #tpu.memory_space<vmem>>, vector<2x128xbf16>
    %1 = arith.extf %0 : vector<2x128xbf16> to vector<2x128xf32>
    %c0_1 = arith.constant 0 : index
    %c0_2 = arith.constant 0 : index
    %2 = vector.load %arg2[%c0_1, %c0_2] : memref<128x128xf32, #tpu.memory_space<vmem>>, vector<128x128xf32>
    %cst = arith.constant dense<0.000000e+00> : vector<2x128xf32>
    %3 = tpu.matmul %1, %2, %cst {dimension_numbers = #tpu.dot_dimension_numbers<[1], [0], [0], [1], [0, 0, 1, 1], [], []>} : vector<2x128xf32>, vector<128x128xf32>, vector<2x128xf32> -> vector<2x128xf32>
    %c0_3 = arith.constant 0 : index
    %c0_4 = arith.constant 0 : index
    %4 = vector.load %arg3[%c0_3, %c0_4] : memref<1x128xf32, #tpu.memory_space<vmem>>, vector<1x128xf32>
    %5 = vector.broadcast %4 : vector<1x128xf32> to vector<2x128xf32>
    %6 = arith.addf %3, %5 : vector<2x128xf32>
    %cst_5 = arith.constant 0.000000e+00 : f32
    %7 = vector.broadcast %cst_5 : f32 to vector<2x128xf32>
    %8 = arith.maximumf %6, %7 : vector<2x128xf32>
    %c0_6 = arith.constant 0 : index
    %c0_7 = arith.constant 0 : index
    %9 = vector.load %arg4[%c0_6, %c0_7] : memref<2x128xf32, #tpu.memory_space<vmem>>, vector<2x128xf32>
    tpu.vector_store %arg4[%c0_6, %c0_7], %8 {strides = array<i32>} : memref<2x128xf32, #tpu.memory_space<vmem>>, vector<2x128xf32>,
    return
  }
  func.func @transform_0(%arg0: i32) -> (i32, i32) {
    %c0_i32 = arith.constant 0 : i32
    %c0_i32_0 = arith.constant 0 : i32
    return %arg0, %c0_i32 : i32, i32
  }
  func.func @transform_1(%arg0: i32) -> (i32, i32) {
    %c0_i32 = arith.constant 0 : i32
    %c0_i32_0 = arith.constant 0 : i32
    %c0_i32_1 = arith.constant 0 : i32
    return %c0_i32, %c0_i32_0 : i32, i32
  }
  func.func @transform_2(%arg0: i32) -> (i32, i32) {
    %c0_i32 = arith.constant 0 : i32
    %c0_i32_0 = arith.constant 0 : i32
    %c0_i32_1 = arith.constant 0 : i32
    return %c0_i32, %c0_i32_0 : i32, i32
  }
  func.func @transform_3(%arg0: i32) -> (i32, i32) {
    %c0_i32 = arith.constant 0 : i32
    %c0_i32_0 = arith.constant 0 : i32
    return %arg0, %c0_i32 : i32, i32
  }
}

</mosaic_0001>

<bundles_post_ra>
// kernel: tpu_custom_call.1
= control target key start
LH: loop header
LB: loop body
LE: loop exit
PB: predicated region body
PF: predicated region fallthrough
CT: control target
= control target key end

     0   :  { %8 = vsyncpa [#allocation3], 0  ;;  %s228_s0 = inlined_call_operand.hbm [shape: bf16[2,128], index: 0, kind: input, shape index: {}]   ;;  %s229_s1 = inlined_call_operand.hbm [shape: f32[128,128], index: 1, kind: input, shape index: {}]   ;;  %s230_s2 = inlined_call_operand.vmem [shape: f32[1,128], index: 2, kind: input, shape index: {}]   ;;  %s231_s3 = inlined_call_operand.hbm [shape: f32[2,128], index: 3, kind: output, shape index: {}]  }
   0x1   :  { %9 = vsyncpa [#allocation6], 0 }
   0x2   :  { %10 = vsyncpa [#allocation4], 0  ;;  %s16_s14 = sshll.u32 %s228_s0, 4  ;;  %s191_s15 = smov [#allocation2]   ;;  %s17_s14 = int_to_ptr.hbm [resolvable:$true] %s16_s14 }
   0x3   :  { %s18_s16 = sshll.u32 %s191_s15, 4  ;;  %s26_s19 = sshll.u32 %s229_s1, 4  ;;  %s19_s16 = int_to_ptr.vmem [resolvable:$true] %s18_s16  ;;  %s27_s19 = int_to_ptr.hbm [resolvable:$true] %s26_s19 }
   0x4   :  { %21 = dma.hbm_to_vmem [thread:$0]  %s17_s14, 16, %s19_s16, [#allocation3]  }
   0x5   :  { %s192_s20 = smov [#allocation5]   ;;  %s193_s22 = smov 128  }
   0x6   :  { %s28_s21 = sshll.u32 %s192_s20, 4  ;;  %s194_s23 = smov 8   ;;  %s29_s21 = int_to_ptr.vmem [resolvable:$true] %s28_s21 }
   0x7   :  { %34 = dma.hbm_to_vmem [thread:$0]  %s27_s19, 2048, %s29_s21, [#allocation6], %s193_s22, %s193_s22, %s194_s23  }
   0x8   :  { %185 = dma.done.wait [#allocation3], 16  }
   0x9   :  { %186 = vsyncadd [#allocation3], 4294967280 }
   0xa   :  { %187 = dma.done.wait [#allocation6], 2048  }
   0xb   :  { %188 = vsyncadd [#allocation6], 4294965248  ;;  %v62_v0 = vld [vmem:[#allocation5 + $0x78] sm:$0xff]  ;;  %v61_v1 = vld [vmem:[#allocation5 + $0x70] sm:$0xff]  ;;  %s195_s24 = smov [#allocation7]   ;;  %s96_s28 = sshll.u32 %s231_s3, 4  ;;  %s97_s28 = int_to_ptr.hbm [resolvable:$true] %s96_s28 }
   0xc   :  { %67 = vmatpush.msra.mxu0 %v62_v0  ;;  %v60_v2 = vld [vmem:[#allocation5 + $0x68] sm:$0xff]  ;;  %v59_v3 = vld [vmem:[#allocation5 + $0x60] sm:$0xff]  ;;  %v58_v4 = vld [vmem:[#allocation5 + $0x58] sm:$0xff]  ;;  %s94_s25 = sshll.u32 %s195_s24, 4  ;;  %s95_s25 = int_to_ptr.vmem [resolvable:$true] %s94_s25 }
   0xd   :  { %v57_v5 = vld [vmem:[#allocation5 + $0x50] sm:$0xff]  ;;  %v56_v6 = vld [vmem:[#allocation5 + $0x48] sm:$0xff]  ;;  %v55_v7 = vld [vmem:[#allocation5 + $0x40] sm:$0xff] }
   0xe   :  { %68 = vmatpush.msra.mxu0 %v61_v1  ;;  %v54_v8 = vld [vmem:[#allocation5 + $0x38] sm:$0xff]  ;;  %v53_v9 = vld [vmem:[#allocation5 + $0x30] sm:$0xff]  ;;  %v52_v10 = vld [vmem:[#allocation5 + $0x28] sm:$0xff] }
   0xf   :  { %v51_v11 = vld [vmem:[#allocation5 + $0x20] sm:$0xff]  ;;  %v50_v12 = vld [vmem:[#allocation5 + $0x18] sm:$0xff]  ;;  %v49_v13 = vld [vmem:[#allocation5 + $0x10] sm:$0xff] }
  0x10   :  { %69 = vmatpush.msra.mxu0 %v60_v2  ;;  %v45_v14 = vld [vmem:[#allocation2] sm:$0x1]  ;;  %v48_v15 = vld [vmem:[#allocation5 + $0x8] sm:$0xff]  ;;  %v47_v16 = vld [vmem:[#allocation5] sm:$0xff] }
  0x11   :  { %v46_v17 = vunpack.c.l.bf16 %v45_v14  ;;  %v112_v18 = vld [vmem:[%s230_s2] ss:$0 sm:$0xff] }
  0x12   :  { %70 = vmatpush.msra.mxu0 %v59_v3 }
  0x14   :  { %71 = vmatpush.msra.mxu0 %v58_v4 }
  0x16   :  { %72 = vmatpush.msra.mxu0 %v57_v5 }
  0x18   :  { %73 = vmatpush.msra.mxu0 %v56_v6 }
  0x1a   :  { %74 = vmatpush.msra.mxu0 %v55_v7 }
  0x1c   :  { %75 = vmatpush.msra.mxu0 %v54_v8 }
  0x1e   :  { %76 = vmatpush.msra.mxu0 %v53_v9 }
  0x20   :  { %77 = vmatpush.msra.mxu0 %v52_v10 }
  0x22   :  { %78 = vmatpush.msra.mxu0 %v51_v11 }
  0x24   :  { %79 = vmatpush.msra.mxu0 %v50_v12 }
  0x26   :  { %80 = vmatpush.msra.mxu0 %v49_v13 }
  0x28   :  { %81 = vmatpush.msra.mxu0 %v48_v15 }
  0x2a   :  { %82 = vmatpush.msra.mxu0 %v47_v16 }
  0x2b   :  { %83 = vmatmul.f32.vlgmr.msra.gmra.mxu0 %v46_v17 }
  0xa8   :  { %v84_v19 = vpop.f32.mrf.mxu0 }
  0xa9   :  { %v85_v20 = vadd.f32 %v112_v18, %v84_v19 }
  0xab   :  { %v87_v21 = vmax.f32 %v85_v20, 0.0 }
  0xad   :  { %88 = vst [vmem:[#allocation7] sm:$0x3] %v87_v21 }
  0xae   :  { %99 = dma.vmem_to_hbm [thread:$0]  %s95_s25, 32, %s97_s28, [#allocation4]  }
  0xaf   :  { %189 = dma.done.wait [#allocation4], 32  }
  0xb0   :  { %190 = vsyncadd [#allocation4], 4294967264 }
  0xb1   :  { %104 = vsyncpa [#allocation3], 1 }
  0xb2   :  { %105 = vsyncpa [#allocation6], 1 }
  0xb3   :  { %106 = vsyncpa [#allocation4], 1 }

</bundles_post_ra>
